<compile_context>
chip_gen: v7x
topology: tpu7x:2x2x1
jax: 0.10.0
libtpu: 0.0.40
codegen_flags: <defaults>
</compile_context>

<pallas_src>
import functools

import jax
import jax.numpy as jnp
import numpy as np
from jax import lax
from jax.experimental import pallas as pl
from jax.experimental.pallas import tpu as pltpu


def _basic_conv2d_kernel(x_ref, w_ref, b_ref, o_ref, patch_ref, *,
                         kh_size, kw_size, stride, dilation, need_relu):
    # x_ref:     (Hp, Wp, Cin)            full padded image (batch squeezed)
    # w_ref:     (KH*KW*Cin, tCo)         BN-scale-folded, flattened weights
    # b_ref:     (1, tCo)                 folded BN bias
    # o_ref:     (tHo, Wo, tCo)           output tile
    # patch_ref: (tHo, Wo, KH*KW*Cin)     im2col scratch (VMEM)
    tho, wo, tco = o_ref.shape
    cin = x_ref.shape[-1]
    k_total = kh_size * kw_size * cin

    t = pl.program_id(1)              # Ho-tile index
    r0 = t * tho * stride             # first input row for this output tile

    # im2col: gather all KH*KW taps into one (tHo, Wo, KH*KW*Cin) patch so the
    # whole contraction runs as a single deep-K MXU matmul.
    for i in range(kh_size):
        for j in range(kw_size):
            tap = i * kw_size + j
            if stride == 1:
                win = x_ref[pl.ds(r0 + i * dilation, tho),
                            pl.ds(j * dilation, wo), :]
            else:
                # Slow path (strided window); not exercised by the tests below.
                win = x_ref[pl.ds(r0 + i * dilation, tho, stride),
                            pl.ds(j * dilation, wo, stride), :]
            patch_ref[:, :, tap * cin:(tap + 1) * cin] = win

    patch = patch_ref[...].reshape(tho * wo, k_total)
    acc = jnp.dot(patch, w_ref[...], preferred_element_type=jnp.float32)
    y = acc + b_ref[...]              # BN scale already folded into w; bias only
    if need_relu:
        y = jnp.maximum(y, 0.0)
    o_ref[...] = y.reshape(tho, wo, tco).astype(o_ref.dtype)


def _pick_row_tile(ho, wo, target_elems=1024):
    """Largest divisor of ho such that tile_rows * wo stays modest."""
    max_rows = max(1, target_elems // max(wo, 1))
    for d in range(min(ho, max_rows), 0, -1):
        if ho % d == 0:
            return d
    return 1


def basic_conv2d(x_nchw, weight_oihw, gamma, beta, running_mean, running_var,
                 *, stride=1, padding=0, dilation=1, need_relu=True, eps=1e-5,
                 compute_dtype=None, block_h=None):
    n, cin, h, w = x_nchw.shape
    cout, cin_w, kh, kw = weight_oihw.shape
    assert cin == cin_w

    ho = (h + 2 * padding - dilation * (kh - 1) - 1) // stride + 1
    wo = (w + 2 * padding - dilation * (kw - 1) - 1) // stride + 1

    out_dtype = x_nchw.dtype
    if compute_dtype is None:
        compute_dtype = x_nchw.dtype

    # NCHW -> NHWC + zero pad (once).
    x_nhwc = jnp.transpose(x_nchw, (0, 2, 3, 1))
    x_pad = jnp.pad(x_nhwc,
                    ((0, 0), (padding, padding), (padding, padding), (0, 0)))
    x_pad = x_pad.astype(compute_dtype)
    hp, wp = x_pad.shape[1], x_pad.shape[2]

    # Fold eval-mode BatchNorm into the weights (scale) and a per-channel bias.
    inv_std = lax.rsqrt(running_var.astype(jnp.float32) + eps)
    scale = gamma.astype(jnp.float32) * inv_std                   # (Cout,)
    bias = beta.astype(jnp.float32) - running_mean.astype(jnp.float32) * scale

    w_hwio = jnp.transpose(weight_oihw, (2, 3, 1, 0)).astype(jnp.float32)
    w_folded = w_hwio * scale[None, None, None, :]                # (KH,KW,Cin,Cout)

    # Pad Cout up to a multiple of 128 so output stores are lane-dense.
    tco = 128
    coutp = ((cout + tco - 1) // tco) * tco
    if coutp != cout:
        w_folded = jnp.pad(w_folded,
                           ((0, 0), (0, 0), (0, 0), (0, coutp - cout)))
        bias = jnp.pad(bias, (0, coutp - cout))
    w_flat = w_folded.reshape(kh * kw * cin, coutp).astype(compute_dtype)
    bias2 = bias.reshape(1, coutp)

    # Spatial (Ho) tiling.
    if block_h is not None and ho % block_h == 0:
        tho = block_h
    else:
        tho = _pick_row_tile(ho, wo)

    kernel = functools.partial(_basic_conv2d_kernel,
                               kh_size=kh, kw_size=kw, stride=stride,
                               dilation=dilation, need_relu=need_relu)

    out_nhwc = pl.pallas_call(
        kernel,
        out_shape=jax.ShapeDtypeStruct((n, ho, wo, coutp), out_dtype),
        grid_spec=pltpu.PrefetchScalarGridSpec(
            num_scalar_prefetch=0,
            grid=(n, ho // tho, coutp // tco),
            in_specs=[
                # Full padded image per batch element; resident across (t, c).
                pl.BlockSpec((None, hp, wp, cin), lambda b, t, c: (b, 0, 0, 0)),
                # Flattened, BN-folded weights: one Cout tile per grid step.
                pl.BlockSpec((kh * kw * cin, tco), lambda b, t, c: (0, c)),
                # Folded bias tile.
                pl.BlockSpec((1, tco), lambda b, t, c: (0, c)),
            ],
            out_specs=pl.BlockSpec((None, tho, wo, tco),
                                   lambda b, t, c: (b, t, 0, c)),
            scratch_shapes=[pltpu.VMEM((tho, wo, kh * kw * cin), compute_dtype)],
        ),
        compiler_params=pltpu.CompilerParams(
            dimension_semantics=("parallel", "parallel", "parallel"),
            vmem_limit_bytes=48 * 1024 * 1024,
        ),
    )(x_pad, w_flat, bias2)

    if coutp != cout:
        out_nhwc = out_nhwc[..., :cout]
    return jnp.transpose(out_nhwc, (0, 3, 1, 2))  # back to NCHW


def basic_conv2d_ref(x, w, gamma, beta, mean, var, *, stride, padding,
                     dilation, need_relu, eps=1e-5):
    y = lax.conv_general_dilated(
        x, w, window_strides=(stride, stride),
        padding=[(padding, padding), (padding, padding)],
        rhs_dilation=(dilation, dilation),
        dimension_numbers=("NCHW", "OIHW", "NCHW"))
    s = (gamma / jnp.sqrt(var + eps)).reshape(1, -1, 1, 1)
    b = (beta - mean * gamma / jnp.sqrt(var + eps)).reshape(1, -1, 1, 1)
    y = y * s + b
    if need_relu:
        y = jnp.maximum(y, 0.0)
    return y


if __name__ == "__main__":
    key = jax.random.PRNGKey(0)
    k1, k2, k3, k4, k5, k6, k7 = jax.random.split(key, 7)

    N, Cin, H, W = 2, 4, 16, 16
    Cout = 8

    x = jax.random.normal(k1, (N, Cin, H, W), jnp.float32)
    gamma = 1.0 + 0.1 * jax.random.normal(k3, (Cout,), jnp.float32)
    beta = 0.1 * jax.random.normal(k4, (Cout,), jnp.float32)
    running_mean = 0.1 * jax.random.normal(k5, (Cout,), jnp.float32)
    running_var = jax.random.uniform(k6, (Cout,), jnp.float32, 0.5, 1.5)

    # --- Test 1: 3x3, pad=1, ReLU, f32 compute ---------------------------------
    w3 = 0.1 * jax.random.normal(k2, (Cout, Cin, 3, 3), jnp.float32)
    out = basic_conv2d(x, w3, gamma, beta, running_mean, running_var,
                       stride=1, padding=1, dilation=1, need_relu=True,
                       block_h=8)
    out = jax.block_until_ready(out)
    ref = basic_conv2d_ref(x, w3, gamma, beta, running_mean, running_var,
                           stride=1, padding=1, dilation=1, need_relu=True)
    np.testing.assert_allclose(np.asarray(out), np.asarray(ref),
                               rtol=1e-4, atol=1e-4)

    # --- Test 2: 1x1, pad=0, no ReLU, f32 compute ------------------------------
    w1 = 0.1 * jax.random.normal(k7, (Cout, Cin, 1, 1), jnp.float32)
    out1 = basic_conv2d(x, w1, gamma, beta, running_mean, running_var,
                        stride=1, padding=0, dilation=1, need_relu=False,
                        block_h=8)
    out1 = jax.block_until_ready(out1)
    ref1 = basic_conv2d_ref(x, w1, gamma, beta, running_mean, running_var,
                            stride=1, padding=0, dilation=1, need_relu=False)
    np.testing.assert_allclose(np.asarray(out1), np.asarray(ref1),
                               rtol=1e-4, atol=1e-4)

    # --- Test 3: 3x3, pad=1, ReLU, bf16 compute (f32 accumulate) ---------------
    out_bf16 = basic_conv2d(x, w3, gamma, beta, running_mean, running_var,
                            stride=1, padding=1, dilation=1, need_relu=True,
                            compute_dtype=jnp.bfloat16, block_h=8)
    out_bf16 = jax.block_until_ready(out_bf16)
    np.testing.assert_allclose(np.asarray(out_bf16), np.asarray(ref),
                               rtol=5e-2, atol=5e-2)

    print("KERNEL_OK")
</pallas_src>

<mosaic_0001>
module attributes {stable_mosaic.version = 11 : i64} {
  func.func @_basic_conv2d_kernel(%arg0: i32, %arg1: i32, %arg2: i32, %arg3: memref<1x18x18x4xf32, #tpu.memory_space<vmem>>, %arg4: memref<36x128xf32, #tpu.memory_space<vmem>>, %arg5: memref<1x128xf32, #tpu.memory_space<vmem>>, %arg6: memref<1x8x16x128xf32, #tpu.memory_space<vmem>>, %arg7: memref<8x16x36xf32, #tpu.memory_space<vmem>>) attributes {dimension_semantics = [#tpu.dimension_semantics<parallel>, #tpu.dimension_semantics<parallel>, #tpu.dimension_semantics<parallel>], iteration_bounds = array<i64: 2, 2, 1>, scalar_prefetch = 0 : i64, scratch_operands = 1 : i64, tpu.core_type = #tpu.core_type<tc>, window_params = [{transform_indices = @transform_0, window_bounds = array<i64: 1, 18, 18, 4>}, {transform_indices = @transform_1, window_bounds = array<i64: 36, 128>}, {transform_indices = @transform_2, window_bounds = array<i64: 1, 128>}, {transform_indices = @transform_3, window_bounds = array<i64: 1, 8, 16, 128>}]} {
    %c8_i32 = arith.constant 8 : i32
    %0 = arith.muli %arg1, %c8_i32 : i32
    %c1_i32 = arith.constant 1 : i32
    %1 = arith.muli %0, %c1_i32 : i32
    %c0_i32 = arith.constant 0 : i32
    %2 = arith.addi %1, %c0_i32 : i32
    %c0 = arith.constant 0 : index
    %3 = arith.index_cast %2 : i32 to index
    %c0_0 = arith.constant 0 : index
    %c0_1 = arith.constant 0 : index
    %4 = vector.load %arg3[%c0, %3, %c0_0, %c0_1] : memref<1x18x18x4xf32, #tpu.memory_space<vmem>>, vector<1x8x16x4xf32>
    %5 = vector.shape_cast %4 : vector<1x8x16x4xf32> to vector<8x16x4xf32>
    %c0_2 = arith.constant 0 : index
    %c0_3 = arith.constant 0 : index
    %c0_4 = arith.constant 0 : index
    %6 = vector.load %arg7[%c0_2, %c0_3, %c0_4] : memref<8x16x36xf32, #tpu.memory_space<vmem>>, vector<8x16x4xf32>
    tpu.vector_store %arg7[%c0_2, %c0_3, %c0_4], %5 {strides = array<i32>} : memref<8x16x36xf32, #tpu.memory_space<vmem>>, vector<8x16x4xf32>,
    %c0_i32_5 = arith.constant 0 : i32
    %7 = arith.addi %1, %c0_i32_5 : i32
    %c0_6 = arith.constant 0 : index
    %8 = arith.index_cast %7 : i32 to index
    %c1 = arith.constant 1 : index
    %c0_7 = arith.constant 0 : index
    %9 = vector.load %arg3[%c0_6, %8, %c1, %c0_7] : memref<1x18x18x4xf32, #tpu.memory_space<vmem>>, vector<1x8x16x4xf32>
    %10 = vector.shape_cast %9 : vector<1x8x16x4xf32> to vector<8x16x4xf32>
    %c0_8 = arith.constant 0 : index
    %c0_9 = arith.constant 0 : index
    %c4 = arith.constant 4 : index
    %11 = vector.load %arg7[%c0_8, %c0_9, %c4] : memref<8x16x36xf32, #tpu.memory_space<vmem>>, vector<8x16x4xf32>
    tpu.vector_store %arg7[%c0_8, %c0_9, %c4], %10 {strides = array<i32>} : memref<8x16x36xf32, #tpu.memory_space<vmem>>, vector<8x16x4xf32>,
    %c0_i32_10 = arith.constant 0 : i32
    %12 = arith.addi %1, %c0_i32_10 : i32
    %c0_11 = arith.constant 0 : index
    %13 = arith.index_cast %12 : i32 to index
    %c2 = arith.constant 2 : index
    %c0_12 = arith.constant 0 : index
    %14 = vector.load %arg3[%c0_11, %13, %c2, %c0_12] : memref<1x18x18x4xf32, #tpu.memory_space<vmem>>, vector<1x8x16x4xf32>
    %15 = vector.shape_cast %14 : vector<1x8x16x4xf32> to vector<8x16x4xf32>
    %c0_13 = arith.constant 0 : index
    %c0_14 = arith.constant 0 : index
    %c8 = arith.constant 8 : index
    %16 = vector.load %arg7[%c0_13, %c0_14, %c8] : memref<8x16x36xf32, #tpu.memory_space<vmem>>, vector<8x16x4xf32>
    tpu.vector_store %arg7[%c0_13, %c0_14, %c8], %15 {strides = array<i32>} : memref<8x16x36xf32, #tpu.memory_space<vmem>>, vector<8x16x4xf32>,
    %c1_i32_15 = arith.constant 1 : i32
    %17 = arith.addi %1, %c1_i32_15 : i32
    %c0_16 = arith.constant 0 : index
    %18 = arith.index_cast %17 : i32 to index
    %c0_17 = arith.constant 0 : index
    %c0_18 = arith.constant 0 : index
    %19 = vector.load %arg3[%c0_16, %18, %c0_17, %c0_18] : memref<1x18x18x4xf32, #tpu.memory_space<vmem>>, vector<1x8x16x4xf32>
    %20 = vector.shape_cast %19 : vector<1x8x16x4xf32> to vector<8x16x4xf32>
    %c0_19 = arith.constant 0 : index
    %c0_20 = arith.constant 0 : index
    %c12 = arith.constant 12 : index
    %21 = vector.load %arg7[%c0_19, %c0_20, %c12] : memref<8x16x36xf32, #tpu.memory_space<vmem>>, vector<8x16x4xf32>
    tpu.vector_store %arg7[%c0_19, %c0_20, %c12], %20 {strides = array<i32>} : memref<8x16x36xf32, #tpu.memory_space<vmem>>, vector<8x16x4xf32>,
    %c1_i32_21 = arith.constant 1 : i32
    %22 = arith.addi %1, %c1_i32_21 : i32
    %c0_22 = arith.constant 0 : index
    %23 = arith.index_cast %22 : i32 to index
    %c1_23 = arith.constant 1 : index
    %c0_24 = arith.constant 0 : index
    %24 = vector.load %arg3[%c0_22, %23, %c1_23, %c0_24] : memref<1x18x18x4xf32, #tpu.memory_space<vmem>>, vector<1x8x16x4xf32>
    %25 = vector.shape_cast %24 : vector<1x8x16x4xf32> to vector<8x16x4xf32>
    %c0_25 = arith.constant 0 : index
    %c0_26 = arith.constant 0 : index
    %c16 = arith.constant 16 : index
    %26 = vector.load %arg7[%c0_25, %c0_26, %c16] : memref<8x16x36xf32, #tpu.memory_space<vmem>>, vector<8x16x4xf32>
    tpu.vector_store %arg7[%c0_25, %c0_26, %c16], %25 {strides = array<i32>} : memref<8x16x36xf32, #tpu.memory_space<vmem>>, vector<8x16x4xf32>,
    %c1_i32_27 = arith.constant 1 : i32
    %27 = arith.addi %1, %c1_i32_27 : i32
    %c0_28 = arith.constant 0 : index
    %28 = arith.index_cast %27 : i32 to index
    %c2_29 = arith.constant 2 : index
    %c0_30 = arith.constant 0 : index
    %29 = vector.load %arg3[%c0_28, %28, %c2_29, %c0_30] : memref<1x18x18x4xf32, #tpu.memory_space<vmem>>, vector<1x8x16x4xf32>
    %30 = vector.shape_cast %29 : vector<1x8x16x4xf32> to vector<8x16x4xf32>
    %c0_31 = arith.constant 0 : index
    %c0_32 = arith.constant 0 : index
    %c20 = arith.constant 20 : index
    %31 = vector.load %arg7[%c0_31, %c0_32, %c20] : memref<8x16x36xf32, #tpu.memory_space<vmem>>, vector<8x16x4xf32>
    tpu.vector_store %arg7[%c0_31, %c0_32, %c20], %30 {strides = array<i32>} : memref<8x16x36xf32, #tpu.memory_space<vmem>>, vector<8x16x4xf32>,
    %c2_i32 = arith.constant 2 : i32
    %32 = arith.addi %1, %c2_i32 : i32
    %c0_33 = arith.constant 0 : index
    %33 = arith.index_cast %32 : i32 to index
    %c0_34 = arith.constant 0 : index
    %c0_35 = arith.constant 0 : index
    %34 = vector.load %arg3[%c0_33, %33, %c0_34, %c0_35] : memref<1x18x18x4xf32, #tpu.memory_space<vmem>>, vector<1x8x16x4xf32>
    %35 = vector.shape_cast %34 : vector<1x8x16x4xf32> to vector<8x16x4xf32>
    %c0_36 = arith.constant 0 : index
    %c0_37 = arith.constant 0 : index
    %c24 = arith.constant 24 : index
    %36 = vector.load %arg7[%c0_36, %c0_37, %c24] : memref<8x16x36xf32, #tpu.memory_space<vmem>>, vector<8x16x4xf32>
    tpu.vector_store %arg7[%c0_36, %c0_37, %c24], %35 {strides = array<i32>} : memref<8x16x36xf32, #tpu.memory_space<vmem>>, vector<8x16x4xf32>,
    %c2_i32_38 = arith.constant 2 : i32
    %37 = arith.addi %1, %c2_i32_38 : i32
    %c0_39 = arith.constant 0 : index
    %38 = arith.index_cast %37 : i32 to index
    %c1_40 = arith.constant 1 : index
    %c0_41 = arith.constant 0 : index
    %39 = vector.load %arg3[%c0_39, %38, %c1_40, %c0_41] : memref<1x18x18x4xf32, #tpu.memory_space<vmem>>, vector<1x8x16x4xf32>
    %40 = vector.shape_cast %39 : vector<1x8x16x4xf32> to vector<8x16x4xf32>
    %c0_42 = arith.constant 0 : index
    %c0_43 = arith.constant 0 : index
    %c28 = arith.constant 28 : index
    %41 = vector.load %arg7[%c0_42, %c0_43, %c28] : memref<8x16x36xf32, #tpu.memory_space<vmem>>, vector<8x16x4xf32>
    tpu.vector_store %arg7[%c0_42, %c0_43, %c28], %40 {strides = array<i32>} : memref<8x16x36xf32, #tpu.memory_space<vmem>>, vector<8x16x4xf32>,
    %c2_i32_44 = arith.constant 2 : i32
    %42 = arith.addi %1, %c2_i32_44 : i32
    %c0_45 = arith.constant 0 : index
    %43 = arith.index_cast %42 : i32 to index
    %c2_46 = arith.constant 2 : index
    %c0_47 = arith.constant 0 : index
    %44 = vector.load %arg3[%c0_45, %43, %c2_46, %c0_47] : memref<1x18x18x4xf32, #tpu.memory_space<vmem>>, vector<1x8x16x4xf32>
    %45 = vector.shape_cast %44 : vector<1x8x16x4xf32> to vector<8x16x4xf32>
    %c0_48 = arith.constant 0 : index
    %c0_49 = arith.constant 0 : index
    %c32 = arith.constant 32 : index
    %46 = vector.load %arg7[%c0_48, %c0_49, %c32] : memref<8x16x36xf32, #tpu.memory_space<vmem>>, vector<8x16x4xf32>
    tpu.vector_store %arg7[%c0_48, %c0_49, %c32], %45 {strides = array<i32>} : memref<8x16x36xf32, #tpu.memory_space<vmem>>, vector<8x16x4xf32>,
    %c0_50 = arith.constant 0 : index
    %c0_51 = arith.constant 0 : index
    %c0_52 = arith.constant 0 : index
    %47 = vector.load %arg7[%c0_50, %c0_51, %c0_52] : memref<8x16x36xf32, #tpu.memory_space<vmem>>, vector<8x16x36xf32>
    %48 = vector.shape_cast %47 : vector<8x16x36xf32> to vector<128x36xf32>
    %c0_53 = arith.constant 0 : index
    %c0_54 = arith.constant 0 : index
    %49 = vector.load %arg4[%c0_53, %c0_54] : memref<36x128xf32, #tpu.memory_space<vmem>>, vector<36x128xf32>
    %cst = arith.constant dense<0.000000e+00> : vector<128x128xf32>
    %50 = tpu.matmul %48, %49, %cst {dimension_numbers = #tpu.dot_dimension_numbers<[1], [0], [0], [1], [0, 0, 1, 1], [], []>} : vector<128x36xf32>, vector<36x128xf32>, vector<128x128xf32> -> vector<128x128xf32>
    %c0_55 = arith.constant 0 : index
    %c0_56 = arith.constant 0 : index
    %51 = vector.load %arg5[%c0_55, %c0_56] : memref<1x128xf32, #tpu.memory_space<vmem>>, vector<1x128xf32>
    %52 = vector.broadcast %51 : vector<1x128xf32> to vector<128x128xf32>
    %53 = arith.addf %50, %52 : vector<128x128xf32>
    %cst_57 = arith.constant 0.000000e+00 : f32
    %54 = vector.broadcast %cst_57 : f32 to vector<128x128xf32>
    %55 = arith.maximumf %53, %54 : vector<128x128xf32>
    %56 = vector.shape_cast %55 : vector<128x128xf32> to vector<8x16x128xf32>
    %c0_58 = arith.constant 0 : index
    %c0_59 = arith.constant 0 : index
    %c0_60 = arith.constant 0 : index
    %c0_61 = arith.constant 0 : index
    %57 = vector.load %arg6[%c0_58, %c0_59, %c0_60, %c0_61] : memref<1x8x16x128xf32, #tpu.memory_space<vmem>>, vector<1x8x16x128xf32>
    %58 = vector.shape_cast %57 : vector<1x8x16x128xf32> to vector<8x16x128xf32>
    %59 = vector.shape_cast %56 : vector<8x16x128xf32> to vector<1x8x16x128xf32>
    tpu.vector_store %arg6[%c0_58, %c0_59, %c0_60, %c0_61], %59 {strides = array<i32>} : memref<1x8x16x128xf32, #tpu.memory_space<vmem>>, vector<1x8x16x128xf32>,
    return
  }
  func.func @transform_0(%arg0: i32, %arg1: i32, %arg2: i32) -> (i32, i32, i32, i32) {
    %c0_i32 = arith.constant 0 : i32
    %c0_i32_0 = arith.constant 0 : i32
    %c0_i32_1 = arith.constant 0 : i32
    %c0_i32_2 = arith.constant 0 : i32
    return %arg0, %c0_i32, %c0_i32_0, %c0_i32_1 : i32, i32, i32, i32
  }
  func.func @transform_1(%arg0: i32, %arg1: i32, %arg2: i32) -> (i32, i32) {
    %c0_i32 = arith.constant 0 : i32
    %c0_i32_0 = arith.constant 0 : i32
    return %c0_i32, %arg2 : i32, i32
  }
  func.func @transform_2(%arg0: i32, %arg1: i32, %arg2: i32) -> (i32, i32) {
    %c0_i32 = arith.constant 0 : i32
    %c0_i32_0 = arith.constant 0 : i32
    return %c0_i32, %arg2 : i32, i32
  }
  func.func @transform_3(%arg0: i32, %arg1: i32, %arg2: i32) -> (i32, i32, i32, i32) {
    %c0_i32 = arith.constant 0 : i32
    %c0_i32_0 = arith.constant 0 : i32
    return %arg0, %arg1, %c0_i32, %arg2 : i32, i32, i32, i32
  }
}

</mosaic_0001>

<bundles_post_ra>
// kernel: tpu_custom_call.1
= control target key start
LH: loop header
LB: loop body
LE: loop exit
PB: predicated region body
PF: predicated region fallthrough
CT: control target
= control target key end

     0   :  { %8 = vsyncpa [#allocation4], 0  ;;  %s2497_s0 = inlined_call_operand.vmem [shape: f32[2,18,18,4], index: 0, kind: input, shape index: {}]   ;;  %s2498_s1 = inlined_call_operand.vmem [shape: f32[36,128], index: 1, kind: input, shape index: {}]   ;;  %s2499_s2 = inlined_call_operand.vmem [shape: f32[1,128], index: 2, kind: input, shape index: {}]   ;;  %s2500_s3 = inlined_call_operand.hbm [shape: f32[2,16,16,128], index: 3, kind: output, shape index: {}]  }
   0x1   :  { %10 = vsyncpa [#allocation4 + $0x1], 0  ;;  %s1848_s12 = smov 0   ;;  %s1850_s13 = smov 0  }
   0x2   :  { %s1852_s14 = smov 0   ;;  %s1854_s15 = smov 0  }
   0x3   :  { %s1856_s16 = smov 0   ;;  %s1858_s17 = smov 0  }
   0x4   :  { %s1860_s18 = smov 0   ;;  %s1862_s19 = smov 0  }
   0x5 LB: > { %s1435_s20 = sadd.s32 4294967295, %s1816_s19   ;;  %s1436_s21 = sadd.s32 4294967294, %s1816_s19   ;;  %s1816_s19 = sphi %s1862_s19, %s16_s19   ;;  %s1812_s18 = sphi %s1860_s18, %s2512_s18   ;;  %s1808_s17 = sphi %s1858_s17, %s2511_s17   ;;  %s1804_s16 = sphi %s1856_s16, %s2510_s16   ;;  %s1800_s15 = sphi %s1854_s15, %s2509_s15   ;;  %s1796_s14 = sphi %s1852_s14, %s2508_s14   ;;  %s1792_s13 = sphi %s1850_s13, %s2507_s13   ;;  %s1788_s12 = sphi %s1848_s12, %s2506_s12  }
   0x6   : > { %s31_s22 = sadd.s32 1, %s1808_s17  ;;  %s35_s23 = sadd.s32 1, %s1812_s18 }
   0x7   : > { %p33_p0 = scmp.ge.s32.totalorder %s31_s22, 2  ;;  %p134_p1 = scmp.ne.s32.totalorder %s1796_s14, %s1792_s13 }
   0x8   : > { %p135_p2 = scmp.eq.s32.totalorder %s1435_s20, 3  ;;  %p140_p5 = scmp.ne.s32.totalorder %s1792_s13, %s1788_s12 }
   0x9   : > { %s2514_s22 = smov (%p33_p0, %s31_s22), 0  ;;  %s2516_s23 = smov (!%p33_p0, %s35_s23), %s1812_s18 }
   0xa   : > { %s118_s24 = ssub.s32 %s1808_s17, %s2514_s22  ;;  %p1899_p3 = por %p135_p2, %p134_p1 }
   0xb   : > { %p37_p4 = scmp.ge.s32.totalorder %s2516_s23, 2  ;;  %p141_p6 = scmp.eq.s32.totalorder %s1436_s21, 3 }
   0xc   : > { %p1441_p7 = scmp.ge.s32.totalorder %s1816_s19, 1  ;;  %p180_p9 = scmp.lt.s32.totalorder %s1816_s19, 5 }
   0xd   : > { %s2518_s23 = smov (%p37_p4, %s2516_s23), 0  ;;  %p1908_p8 = por %p141_p6, %p140_p5 }
   0xe   : > { %s117_s27 = ssub.s32 %s1812_s18, %s2518_s23  ;;  %s124_s28 = sadd.s32 1, %s1796_s14 }
   0xf   : > { %s119_s29 = sor.u32 %s118_s24, %s117_s27  ;;  %p181_p10 = pnand %p1441_p7, %p180_p9 }
  0x10   : > { %p122_p11 = scmp.eq.s32.totalorder %s119_s29, 0  ;;  %p211_p12 = scmp.lt.s32.totalorder (!%p181_p10), %s1804_s16, 1  ;;  %vm243_vm0 = vcmask (!%p181_p10), 31744   ;;  %v1058_v38 = vld [vmem:[%s2498_s1] sm:$0xff] (!%p181_p10)  ;;  %v1059_v39 = vld [vmem:[%s2498_s1 + $0x8] sm:$0xff] (!%p181_p10)  ;;  %v1060_v41 = vld [vmem:[%s2498_s1 + $0x10] sm:$0xff] (!%p181_p10) }
  0x11   : > { %184 = sbr.rel (%p181_p10) target bundleno = 639 (0x27f), region = 32  ;;  %s1818_s11 = smov (!%p181_p10), 4   ;;  %v1627_v40 = vpack.c.bf16 (!%p181_p10), %v1059_v39, %v1058_v38  ;;  %v1061_v42 = vld [vmem:[%s2498_s1 + $0x18] sm:$0xff] (!%p181_p10)  ;;  %v1062_v44 = vld [vmem:[%s2498_s1 + $0x20] sm:$0xf] (!%p181_p10)  ;;  %vm1119_vm1 = vcmask (!%p181_p10), 1043456  }
  0x12   : > { %s1917_s30 = scalar_select %p122_p11, %s1796_s14, %s124_s28  }
  0x13   : > { %s1445_s5 = smul.u32 (!%p181_p10), 192, %s1800_s15  ;;  %s1819_s20 = smov (!%p181_p10), 8   ;;  %1628 = vmatprep.subr.bf16.mxu0 (!%p181_p10), %v1627_v40  ;;  %1635 = vmatprep.subr.bf16.mxu1 (!%p181_p10), %v1627_v40  ;;  %v1631_v43 = vpack.c.bf16 (!%p181_p10), %v1061_v42, %v1060_v41  ;;  %vm340_vm2 = vcmask (!%p181_p10), 64544   ;;  %vm437_vm3 = vcmask (!%p181_p10), 97344   ;;  %vm537_vm4 = vcmask (!%p181_p10), 130144  }
  0x14   : > { %s1820_s21 = smov (!%p181_p10), 12   ;;  %s1821_s24 = smov (!%p181_p10), 16   ;;  %1630 = vmatpush3.bf16.msra.mxu0 (!%p181_p10), %v1627_v40  ;;  %1638 = vmatpush3.bf16.msra.mxu1 (!%p181_p10), %v1627_v40  ;;  %vm634_vm5 = vcmask (!%p181_p10), 162944   ;;  %vm731_vm6 = vcmask (!%p181_p10), 195744   ;;  %vm831_vm7 = vcmask (!%p181_p10), 228544   ;;  %vm928_vm8 = vcmask (!%p181_p10), 261344  }
  0x15   : > { %s1822_s27 = smov (!%p181_p10), 20   ;;  %s1823_s28 = smov (!%p181_p10), 24   ;;  %1632 = vmatprep.subr.bf16.mxu0 (!%p181_p10), %v1631_v43  ;;  %1636 = vmatprep.subr.bf16.mxu1 (!%p181_p10), %v1631_v43  ;;  %vm1025_vm9 = vcmask (!%p181_p10), 294144   ;;  %vm1070_vm10 = vcmask (!%p181_p10), 293888  }
  0x16   : > { %s2501_s29 = smov (!%p181_p10), 28   ;;  %s1825_s8 = smov (!%p181_p10), 32  }
  0x17   : > { %s2505_s7 = smov (!%p181_p10), 28  }
  0x18   : > { %s212_s4 = scalar_select %p211_p12, %s1804_s16, 1  ;;  %1634 = vmatpush3.bf16.msra.mxu0 %v1631_v43  ;;  %1639 = vmatpush3.bf16.msra.mxu1 %v1631_v43 }
  0x19   : > { %1601 = vmatprep.subr.msk.mxu0 %vm1119_vm1, %v1062_v44  ;;  %1637 = vmatprep.subr.msk.mxu1 %vm1119_vm1, %v1062_v44 }
  0x1a   : > { %s1641_s6 = smul.u32 432, %s212_s4 }
  0x1c   : > { %s215_s9 = scalar_lea.vmem %s2497_s0, %s1641_s6  ;;  %1602 = vmatpush3.msk.msra.mxu0 %vm1119_vm1, %v1062_v44  ;;  %1640 = vmatpush3.msk.msra.mxu1 %vm1119_vm1, %v1062_v44 }
  0x1d   : > { %s1925_s10 = scalar_lea.vmem %s215_s9, %s1445_s5 }
  0x1e   : > { %v261_v0 = vld [vmem:[%s1925_s10 + $0x9] sm:$0xff]  ;;  %v260_v1 = vld [vmem:[%s1925_s10 + $0x1] sm:$0xff]  ;;  %v1938_v4 = vld [vmem:[%s1925_s10 + $0x78] sm:$0xff] }
  0x1f   : > { %294 = vrot.lane.b32.xlu1 %v261_v0, %s1818_s11  ;;  %292 = vrot.lane.b32.xlu0 %v260_v1, %s1818_s11  ;;  %v1932_v2 = vld [vmem:[%s1925_s10 + $0x69] sm:$0xff]  ;;  %v1935_v3 = vld [vmem:[%s1925_s10 + $0x61] sm:$0xff]  ;;  %254 = vst.msk [vmem:[#allocation2 + $0x50] sm:$0xff] %vm243_vm0, %v1938_v4 }
  0x20   : > { %v1448_v5 = vld [vmem:[%s1925_s10 + $0x18] sm:$0xff]  ;;  %v1942_v6 = vld [vmem:[%s1925_s10 + $0x80] sm:$0xff]  ;;  %v1960_v10 = vld [vmem:[%s1925_s10 + $0x90] sm:$0xff] }
  0x21   : > { %v1449_v7 = vld [vmem:[%s1925_s10 + $0x20] sm:$0xff]  ;;  %246 = vst.msk [vmem:[#allocation2 + $0x10] sm:$0xff] %vm243_vm0, %v1448_v5  ;;  %255 = vst.msk [vmem:[#allocation2 + $0x58] sm:$0xff] %vm243_vm0, %v1942_v6  ;;  %v1963_v11 = vld [vmem:[%s1925_s10 + $0x30] sm:$0xff] }
  0x22   : > { %247 = vst.msk [vmem:[#allocation2 + $0x18] sm:$0xff] %vm243_vm0, %v1449_v7  ;;  %v1956_v8 = vld [vmem:[%s1925_s10 + $0x62] sm:$0xff]  ;;  %v1966_v12 = vld [vmem:[%s1925_s10 + $0x98] sm:$0xff]  ;;  %256 = vst.msk [vmem:[#allocation2 + $0x60] sm:$0xff] %vm243_vm0, %v1960_v10 }
  0x23   : > { %310 = vrot.lane.b32.xlu1 %v1932_v2, %s1818_s11  ;;  %308 = vrot.lane.b32.xlu0 %v1935_v3, %s1818_s11  ;;  %v357_v9 = vld [vmem:[%s1925_s10 + $0x2] sm:$0xff]  ;;  %v1969_v13 = vld [vmem:[%s1925_s10 + $0x38] sm:$0xff]  ;;  %248 = vst.msk [vmem:[#allocation2 + $0x20] sm:$0xff] %vm243_vm0, %v1963_v11  ;;  %257 = vst.msk [vmem:[#allocation2 + $0x68] sm:$0xff] %vm243_vm0, %v1966_v12 }
  0x24   : > { %249 = vst.msk [vmem:[#allocation2 + $0x28] sm:$0xff] %vm243_vm0, %v1969_v13  ;;  %v1983_v14 = vld [vmem:[%s1925_s10 + $0x6a] sm:$0xff]  ;;  %v227_v17 = vld [vmem:[%s1925_s10] sm:$0xff]  ;;  %v1538_v36 = vld [vmem:[%s1925_s10 + $0x92] sm:$0xff] }
  0x25   : > { %v358_v15 = vld [vmem:[%s1925_s10 + $0xa] sm:$0xff]  ;;  %244 = vst.msk [vmem:[#allocation2] sm:$0xff] %vm243_vm0, %v227_v17  ;;  %v2003_v21 = vld [vmem:[%s1925_s10 + $0x60] sm:$0xff]  ;;  %v1530_v37 = vld [vmem:[%s1925_s10 + $0x32] sm:$0xff] }
  0x26   : > { %v228_v16 = vld [vmem:[%s1925_s10 + $0x8] sm:$0xff]  ;;  %252 = vst.msk [vmem:[#allocation2 + $0x40] sm:$0xff] %vm243_vm0, %v2003_v21  ;;  %v2014_v22 = vld [vmem:[%s1925_s10 + $0xb0] sm:$0xff]  ;;  %v2030_v24 = vld [vmem:[%s1925_s10 + $0x79] sm:$0xff] }
  0x27   : > { %405 = vrot.lane.b32.xlu1 %v1956_v8, %s1819_s20  ;;  %389 = vrot.lane.b32.xlu0 %v357_v9, %s1819_s20  ;;  %245 = vst.msk [vmem:[#allocation2 + $0x8] sm:$0xff] %vm243_vm0, %v228_v16  ;;  %v1990_v18 = vld [vmem:[%s1925_s10 + $0xa8] sm:$0xff]  ;;  %v2017_v23 = vld [vmem:[%s1925_s10 + $0x50] sm:$0xff]  ;;  %259 = vst.msk [vmem:[#allocation2 + $0x78] sm:$0xff] %vm243_vm0, %v2014_v22 }
  0x28   : > { %v1993_v19 = vld [vmem:[%s1925_s10 + $0x48] sm:$0xff]  ;;  %258 = vst.msk [vmem:[#allocation2 + $0x70] sm:$0xff] %vm243_vm0, %v1990_v18  ;;  %251 = vst.msk [vmem:[#allocation2 + $0x38] sm:$0xff] %vm243_vm0, %v2017_v23  ;;  %v1464_v25 = vld [vmem:[%s1925_s10 + $0x19] sm:$0xff] }
  0x29   : > { %v2000_v20 = vld [vmem:[%s1925_s10 + $0x68] sm:$0xff]  ;;  %250 = vst.msk [vmem:[#allocation2 + $0x30] sm:$0xff] %vm243_vm0, %v1993_v19  ;;  %v2047_v28 = vld [vmem:[%s1925_s10 + $0x7a] sm:$0xff]  ;;  %v1522_v32 = vld [vmem:[%s1925_s10 + $0x91] sm:$0xff] }
  0x2a   : > { %253 = vst.msk [vmem:[#allocation2 + $0x48] sm:$0xff] %vm243_vm0, %v2000_v20  ;;  %v2040_v26 = vld [vmem:[%s1925_s10 + $0x81] sm:$0xff]  ;;  %v1514_v33 = vld [vmem:[%s1925_s10 + $0x31] sm:$0xff]  ;;  %v1523_v34 = vld [vmem:[%s1925_s10 + $0x99] sm:$0xff] }
  0x2b   : > { %407 = vrot.lane.b32.xlu1 %v1983_v14, %s1819_s20  ;;  %391 = vrot.lane.b32.xlu0 %v358_v15, %s1819_s20  ;;  %v1465_v27 = vld [vmem:[%s1925_s10 + $0x21] sm:$0xff]  ;;  %v1515_v35 = vld [vmem:[%s1925_s10 + $0x39] sm:$0xff] }
  0x2c   : > { %v1480_v29 = vld [vmem:[%s1925_s10 + $0x1a] sm:$0xff]  ;;  %v2060_v30 = vld [vmem:[%s1925_s10 + $0x82] sm:$0xff]  ;;  %v1525_v63 = vld [vmem:[%s1925_s10 + $0xb1] sm:$0xff] }
  0x2d   : > { %v1481_v31 = vld [vmem:[%s1925_s10 + $0x22] sm:$0xff]  ;;  %v1539_v45 = vld [vmem:[%s1925_s10 + $0x9a] sm:$0xff]  ;;  %v1517_v0 = vld [vmem:[%s1925_s10 + $0x51] sm:$0xff] }
  0x2e   : > { %v1531_v46 = vld [vmem:[%s1925_s10 + $0x3a] sm:$0xff]  ;;  %v1524_v55 = vld [vmem:[%s1925_s10 + $0xa9] sm:$0xff] }
  0x2f   : > { %505 = vrot.lane.b32.xlu1 %v1938_v4, %s1820_s21  ;;  %489 = vrot.lane.b32.xlu0 %v1448_v5, %s1820_s21  ;;  %v1516_v56 = vld [vmem:[%s1925_s10 + $0x49] sm:$0xff] }
  0x30   : > { %v1532_v9 = vld [vmem:[%s1925_s10 + $0x4a] sm:$0xff] }
  0x31   : > { %v1511_v42 = vld [vmem:[%s1925_s10 + $0xc8] sm:$0xff] }
  0x33   : > { %507 = vrot.lane.b32.xlu1 %v1942_v6, %s1820_s21  ;;  %491 = vrot.lane.b32.xlu0 %v1449_v7, %s1820_s21  ;;  %v1540_v7 = vld [vmem:[%s1925_s10 + $0xaa] sm:$0xff] }
  0x37   : > { %602 = vrot.lane.b32.xlu1 %v2030_v24, %s1821_s24  ;;  %586 = vrot.lane.b32.xlu0 %v1464_v25, %s1821_s24 }
  0x3b   : > { %312 = vrot.lane.b32.xlu1 %v2030_v24, %s1818_s11  ;;  %296 = vrot.lane.b32.xlu0 %v1464_v25, %s1818_s11 }
  0x3f   : > { %604 = vrot.lane.b32.xlu1 %v2040_v26, %s1821_s24  ;;  %588 = vrot.lane.b32.xlu0 %v1465_v27, %s1821_s24 }
  0x43   : > { %699 = vrot.lane.b32.xlu1 %v2047_v28, %s1822_s27  ;;  %683 = vrot.lane.b32.xlu0 %v1480_v29, %s1822_s27 }
  0x47   : > { %314 = vrot.lane.b32.xlu1 %v2040_v26, %s1818_s11  ;;  %298 = vrot.lane.b32.xlu0 %v1465_v27, %s1818_s11 }
  0x4b   : > { %409 = vrot.lane.b32.xlu1 %v2047_v28, %s1819_s20  ;;  %393 = vrot.lane.b32.xlu0 %v1480_v29, %s1819_s20 }
  0x4f   : > { %701 = vrot.lane.b32.xlu1 %v2060_v30, %s1822_s27  ;;  %685 = vrot.lane.b32.xlu0 %v1481_v31, %s1822_s27 }
  0x53   : > { %799 = vrot.lane.b32.xlu1 %v1960_v10, %s1823_s28  ;;  %783 = vrot.lane.b32.xlu0 %v1963_v11, %s1823_s28 }
  0x57   : > { %411 = vrot.lane.b32.xlu1 %v2060_v30, %s1819_s20  ;;  %395 = vrot.lane.b32.xlu0 %v1481_v31, %s1819_s20 }
  0x5b   : > { %509 = vrot.lane.b32.xlu1 %v1960_v10, %s1820_s21  ;;  %493 = vrot.lane.b32.xlu0 %v1963_v11, %s1820_s21 }
  0x5f   : > { %801 = vrot.lane.b32.xlu1 %v1966_v12, %s1823_s28  ;;  %785 = vrot.lane.b32.xlu0 %v1969_v13, %s1823_s28 }
  0x63   : > { %896 = vrot.lane.b32.xlu1 %v1522_v32, %s2501_s29  ;;  %880 = vrot.lane.b32.xlu0 %v1514_v33, %s2501_s29 }
  0x67   : > { %511 = vrot.lane.b32.xlu1 %v1966_v12, %s1820_s21  ;;  %495 = vrot.lane.b32.xlu0 %v1969_v13, %s1820_s21 }
  0x6b   : > { %606 = vrot.lane.b32.xlu1 %v1522_v32, %s1821_s24  ;;  %590 = vrot.lane.b32.xlu0 %v1514_v33, %s1821_s24 }
  0x6f   : > { %898 = vrot.lane.b32.xlu1 %v1523_v34, %s2501_s29  ;;  %882 = vrot.lane.b32.xlu0 %v1515_v35, %s2501_s29 }
  0x73   : > { %993 = vrot.lane.b32.xlu1 %v1538_v36, %s1825_s8  ;;  %977 = vrot.lane.b32.xlu0 %v1530_v37, %s1825_s8 }
  0x77   : > { %316 = vrot.lane.b32.xlu1 %v1522_v32, %s1818_s11  ;;  %300 = vrot.lane.b32.xlu0 %v1514_v33, %s1818_s11 }
  0x7b   : > { %608 = vrot.lane.b32.xlu1 %v1523_v34, %s1821_s24  ;;  %592 = vrot.lane.b32.xlu0 %v1515_v35, %s1821_s24 }
  0x7f   : > { %703 = vrot.lane.b32.xlu1 %v1538_v36, %s1822_s27  ;;  %687 = vrot.lane.b32.xlu0 %v1530_v37, %s1822_s27 }
  0x83   : > { %995 = vrot.lane.b32.xlu1 %v1539_v45, %s1825_s8  ;;  %979 = vrot.lane.b32.xlu0 %v1531_v46, %s1825_s8 }
  0x87   : > { %318 = vrot.lane.b32.xlu1 %v1523_v34, %s1818_s11  ;;  %302 = vrot.lane.b32.xlu0 %v1515_v35, %s1818_s11  ;;  %v1510_v35 = vld [vmem:[%s1925_s10 + $0xc0] sm:$0xff] }
  0x8b   : > { %413 = vrot.lane.b32.xlu1 %v1538_v36, %s1819_s20  ;;  %397 = vrot.lane.b32.xlu0 %v1530_v37, %s1819_s20 }
  0x8f   : > { %705 = vrot.lane.b32.xlu1 %v1539_v45, %s1822_s27  ;;  %689 = vrot.lane.b32.xlu0 %v1531_v46, %s1822_s27 }
  0x91   : > { %v295_v47 = vpop.permute.xlu1 %294  ;;  %v293_v48 = vpop.permute.xlu0 %292 }
  0x92   : > { %342 = vst.msk [vmem:[#allocation2 + $0x8] sm:$0xff] %vm340_vm2, %v295_v47  ;;  %341 = vst.msk [vmem:[#allocation2] sm:$0xff] %vm340_vm2, %v293_v48 }
  0x93   : > { %803 = vrot.lane.b32.xlu1 %v1990_v18, %s1823_s28  ;;  %787 = vrot.lane.b32.xlu0 %v1993_v19, %s1823_s28 }
  0x95   : > { %v311_v49 = vpop.permute.xlu1 %310  ;;  %v309_v50 = vpop.permute.xlu0 %308 }
  0x96   : > { %350 = vst.msk [vmem:[#allocation2 + $0x48] sm:$0xff] %vm340_vm2, %v311_v49  ;;  %349 = vst.msk [vmem:[#allocation2 + $0x40] sm:$0xff] %vm340_vm2, %v309_v50 }
  0x97   : > { %415 = vrot.lane.b32.xlu1 %v1539_v45, %s1819_s20  ;;  %399 = vrot.lane.b32.xlu0 %v1531_v46, %s1819_s20  ;;  %v1526_v45 = vld [vmem:[%s1925_s10 + $0xc1] sm:$0xff] }
  0x99   : > { %v406_v51 = vpop.permute.xlu1 %405  ;;  %v390_v52 = vpop.permute.xlu0 %389 }
  0x9a   : > { %446 = vst.msk [vmem:[#allocation2 + $0x40] sm:$0xff] %vm437_vm3, %v406_v51  ;;  %438 = vst.msk [vmem:[#allocation2] sm:$0xff] %vm437_vm3, %v390_v52  ;;  %v1527_v51 = vld [vmem:[%s1925_s10 + $0xc9] sm:$0xff] }
  0x9b   : > { %513 = vrot.lane.b32.xlu1 %v1990_v18, %s1820_s21  ;;  %497 = vrot.lane.b32.xlu0 %v1993_v19, %s1820_s21  ;;  %v1541_v19 = vld [vmem:[%s1925_s10 + $0xb2] sm:$0xff] }
  0x9d   : > { %v408_v53 = vpop.permute.xlu1 %407  ;;  %v392_v54 = vpop.permute.xlu0 %391 }
  0x9e   : > { %447 = vst.msk [vmem:[#allocation2 + $0x48] sm:$0xff] %vm437_vm3, %v408_v53  ;;  %439 = vst.msk [vmem:[#allocation2 + $0x8] sm:$0xff] %vm437_vm3, %v392_v54 }
  0x9f   : > { %805 = vrot.lane.b32.xlu1 %v2014_v22, %s1823_s28  ;;  %789 = vrot.lane.b32.xlu0 %v2017_v23, %s1823_s28 }
  0xa1   : > { %v506_v57 = vpop.permute.xlu1 %505  ;;  %v490_v58 = vpop.permute.xlu0 %489 }
  0xa2   : > { %546 = vst.msk [vmem:[#allocation2 + $0x40] sm:$0xff] %vm537_vm4, %v506_v57  ;;  %538 = vst.msk [vmem:[#allocation2] sm:$0xff] %vm537_vm4, %v490_v58 }
  0xa3   : > { %900 = vrot.lane.b32.xlu1 %v1524_v55, %s2505_s7  ;;  %884 = vrot.lane.b32.xlu0 %v1516_v56, %s2505_s7 }
  0xa5   : > { %v508_v59 = vpop.permute.xlu1 %507  ;;  %v492_v60 = vpop.permute.xlu0 %491 }
  0xa6   : > { %547 = vst.msk [vmem:[#allocation2 + $0x48] sm:$0xff] %vm537_vm4, %v508_v59  ;;  %539 = vst.msk [vmem:[#allocation2 + $0x8] sm:$0xff] %vm537_vm4, %v492_v60 }
  0xa7   : > { %515 = vrot.lane.b32.xlu1 %v2014_v22, %s1820_s21  ;;  %499 = vrot.lane.b32.xlu0 %v2017_v23, %s1820_s21  ;;  %v1533_v22 = vld [vmem:[%s1925_s10 + $0x52] sm:$0xff] }
  0xa9   : > { %v603_v61 = vpop.permute.xlu1 %602  ;;  %v587_v62 = vpop.permute.xlu0 %586 }
  0xaa   : > { %643 = vst.msk [vmem:[#allocation2 + $0x40] sm:$0xff] %vm634_vm5, %v603_v61  ;;  %635 = vst.msk [vmem:[#allocation2] sm:$0xff] %vm634_vm5, %v587_v62  ;;  %v1543_v61 = vld [vmem:[%s1925_s10 + $0xca] sm:$0xff] }
  0xab   : > { %610 = vrot.lane.b32.xlu1 %v1524_v55, %s1821_s24  ;;  %594 = vrot.lane.b32.xlu0 %v1516_v56, %s1821_s24 }
  0xad   : > { %v313_v1 = vpop.permute.xlu1 %312  ;;  %v297_v5 = vpop.permute.xlu0 %296 }
  0xae   : > { %351 = vst.msk [vmem:[#allocation2 + $0x50] sm:$0xff] %vm340_vm2, %v313_v1  ;;  %343 = vst.msk [vmem:[#allocation2 + $0x10] sm:$0xff] %vm340_vm2, %v297_v5  ;;  %v1512_v5 = vld [vmem:[%s1925_s10 + $0xd8] sm:$0xff] }
  0xaf   : > { %902 = vrot.lane.b32.xlu1 %v1525_v63, %s2505_s7  ;;  %886 = vrot.lane.b32.xlu0 %v1517_v0, %s2505_s7 }
  0xb1   : > { %v605_v10 = vpop.permute.xlu1 %604  ;;  %v589_v11 = vpop.permute.xlu0 %588 }
  0xb2   : > { %644 = vst.msk [vmem:[#allocation2 + $0x48] sm:$0xff] %vm634_vm5, %v605_v10  ;;  %636 = vst.msk [vmem:[#allocation2 + $0x8] sm:$0xff] %vm634_vm5, %v589_v11  ;;  %v1513_v10 = vld [vmem:[%s1925_s10 + $0xe0] sm:$0xff] }
  0xb3   : > { %997 = vrot.lane.b32.xlu1 %v1540_v7, %s1825_s8  ;;  %981 = vrot.lane.b32.xlu0 %v1532_v9, %s1825_s8 }
  0xb5   : > { %v700_v12 = vpop.permute.xlu1 %699  ;;  %v684_v13 = vpop.permute.xlu0 %683 }
  0xb6   : > { %740 = vst.msk [vmem:[#allocation2 + $0x40] sm:$0xff] %vm731_vm6, %v700_v12  ;;  %732 = vst.msk [vmem:[#allocation2] sm:$0xff] %vm731_vm6, %v684_v13 }
  0xb7   : > { %320 = vrot.lane.b32.xlu1 %v1524_v55, %s1818_s11  ;;  %304 = vrot.lane.b32.xlu0 %v1516_v56, %s1818_s11 }
  0xb9   : > { %v315_v15 = vpop.permute.xlu1 %314  ;;  %v299_v16 = vpop.permute.xlu0 %298 }
  0xba   : > { %352 = vst.msk [vmem:[#allocation2 + $0x58] sm:$0xff] %vm340_vm2, %v315_v15  ;;  %344 = vst.msk [vmem:[#allocation2 + $0x18] sm:$0xff] %vm340_vm2, %v299_v16 }
  0xbb   : > { %612 = vrot.lane.b32.xlu1 %v1525_v63, %s1821_s24  ;;  %596 = vrot.lane.b32.xlu0 %v1517_v0, %s1821_s24 }
  0xbd   : > { %v410_v17 = vpop.permute.xlu1 %409  ;;  %v394_v18 = vpop.permute.xlu0 %393 }
  0xbe   : > { %448 = vst.msk [vmem:[#allocation2 + $0x50] sm:$0xff] %vm437_vm3, %v410_v17  ;;  %440 = vst.msk [vmem:[#allocation2 + $0x10] sm:$0xff] %vm437_vm3, %v394_v18 }
  0xbf   : > { %707 = vrot.lane.b32.xlu1 %v1540_v7, %s1822_s27  ;;  %691 = vrot.lane.b32.xlu0 %v1532_v9, %s1822_s27 }
  0xc1   : > { %v702_v23 = vpop.permute.xlu1 %701  ;;  %v686_v25 = vpop.permute.xlu0 %685 }
  0xc2   : > { %741 = vst.msk [vmem:[#allocation2 + $0x48] sm:$0xff] %vm731_vm6, %v702_v23  ;;  %733 = vst.msk [vmem:[#allocation2 + $0x8] sm:$0xff] %vm731_vm6, %v686_v25 }
  0xc3   : > { %999 = vrot.lane.b32.xlu1 %v1541_v19, %s1825_s8  ;;  %983 = vrot.lane.b32.xlu0 %v1533_v22, %s1825_s8 }
  0xc5   : > { %v800_v27 = vpop.permute.xlu1 %799  ;;  %v784_v29 = vpop.permute.xlu0 %783 }
  0xc6   : > { %840 = vst.msk [vmem:[#allocation2 + $0x40] sm:$0xff] %vm831_vm7, %v800_v27  ;;  %832 = vst.msk [vmem:[#allocation2] sm:$0xff] %vm831_vm7, %v784_v29 }
  0xc7   : > { %322 = vrot.lane.b32.xlu1 %v1525_v63, %s1818_s11  ;;  %306 = vrot.lane.b32.xlu0 %v1517_v0, %s1818_s11  ;;  %s1826_s11 = smov [#allocation3]  }
  0xc9   : > { %v412_v31 = vpop.permute.xlu1 %411  ;;  %v396_v32 = vpop.permute.xlu0 %395 }
  0xca   : > { %449 = vst.msk [vmem:[#allocation2 + $0x58] sm:$0xff] %vm437_vm3, %v412_v31  ;;  %441 = vst.msk [vmem:[#allocation2 + $0x18] sm:$0xff] %vm437_vm3, %v396_v32 }
  0xcb   : > { %417 = vrot.lane.b32.xlu1 %v1540_v7, %s1819_s20  ;;  %401 = vrot.lane.b32.xlu0 %v1532_v9, %s1819_s20 }
  0xcd   : > { %v510_v33 = vpop.permute.xlu1 %509  ;;  %v494_v34 = vpop.permute.xlu0 %493 }
  0xce   : > { %548 = vst.msk [vmem:[#allocation2 + $0x50] sm:$0xff] %vm537_vm4, %v510_v33  ;;  %540 = vst.msk [vmem:[#allocation2 + $0x10] sm:$0xff] %vm537_vm4, %v494_v34 }
  0xcf   : > { %709 = vrot.lane.b32.xlu1 %v1541_v19, %s1822_s27  ;;  %693 = vrot.lane.b32.xlu0 %v1533_v22, %s1822_s27 }
  0xd1   : > { %v802_v36 = vpop.permute.xlu1 %801  ;;  %v786_v37 = vpop.permute.xlu0 %785 }
  0xd2   : > { %841 = vst.msk [vmem:[#allocation2 + $0x48] sm:$0xff] %vm831_vm7, %v802_v36  ;;  %833 = vst.msk [vmem:[#allocation2 + $0x8] sm:$0xff] %vm831_vm7, %v786_v37 }
  0xd3   : > { %807 = vrot.lane.b32.xlu1 %v1510_v35, %s1823_s28  ;;  %791 = vrot.lane.b32.xlu0 %v2003_v21, %s1823_s28 }
  0xd5   : > { %v897_v38 = vpop.permute.xlu1 %896  ;;  %v881_v39 = vpop.permute.xlu0 %880 }
  0xd6   : > { %937 = vst.msk [vmem:[#allocation2 + $0x40] sm:$0xff] %vm928_vm8, %v897_v38  ;;  %929 = vst.msk [vmem:[#allocation2] sm:$0xff] %vm928_vm8, %v881_v39 }
  0xd7   : > { %419 = vrot.lane.b32.xlu1 %v1541_v19, %s1819_s20  ;;  %403 = vrot.lane.b32.xlu0 %v1533_v22, %s1819_s20 }
  0xd9   : > { %v512_v40 = vpop.permute.xlu1 %511  ;;  %v496_v41 = vpop.permute.xlu0 %495 }
  0xda   : > { %549 = vst.msk [vmem:[#allocation2 + $0x58] sm:$0xff] %vm537_vm4, %v512_v40  ;;  %541 = vst.msk [vmem:[#allocation2 + $0x18] sm:$0xff] %vm537_vm4, %v496_v41 }
  0xdb   : > { %517 = vrot.lane.b32.xlu1 %v1510_v35, %s1820_s21  ;;  %501 = vrot.lane.b32.xlu0 %v2003_v21, %s1820_s21 }
  0xdd   : > { %v607_v43 = vpop.permute.xlu1 %606  ;;  %v591_v44 = vpop.permute.xlu0 %590 }
  0xde   : > { %645 = vst.msk [vmem:[#allocation2 + $0x50] sm:$0xff] %vm634_vm5, %v607_v43  ;;  %637 = vst.msk [vmem:[#allocation2 + $0x10] sm:$0xff] %vm634_vm5, %v591_v44 }
  0xdf   : > { %809 = vrot.lane.b32.xlu1 %v1511_v42, %s1823_s28  ;;  %793 = vrot.lane.b32.xlu0 %v2000_v20, %s1823_s28 }
  0xe1   : > { %v899_v46 = vpop.permute.xlu1 %898  ;;  %v883_v47 = vpop.permute.xlu0 %882 }
  0xe2   : > { %938 = vst.msk [vmem:[#allocation2 + $0x48] sm:$0xff] %vm928_vm8, %v899_v46  ;;  %930 = vst.msk [vmem:[#allocation2 + $0x8] sm:$0xff] %vm928_vm8, %v883_v47 }
  0xe3   : > { %904 = vrot.lane.b32.xlu1 %v1526_v45, %s2505_s7  ;;  %888 = vrot.lane.b32.xlu0 %v1935_v3, %s2505_s7 }
  0xe5   : > { %v994_v21 = vpop.permute.xlu1 %993  ;;  %v978_v48 = vpop.permute.xlu0 %977 }
  0xe6   : > { %1034 = vst.msk [vmem:[#allocation2 + $0x40] sm:$0xff] %vm1025_vm9, %v994_v21  ;;  %1026 = vst.msk [vmem:[#allocation2] sm:$0xff] %vm1025_vm9, %v978_v48 }
  0xe7   : > { %519 = vrot.lane.b32.xlu1 %v1511_v42, %s1820_s21  ;;  %503 = vrot.lane.b32.xlu0 %v2000_v20, %s1820_s21  ;;  %s1726_s21 = sshll.u32 %s1826_s11, 4  ;;  %s1727_s21 = int_to_ptr.vmem [resolvable:$false] %s1726_s21 }
  0xe9   : > { %v317_v49 = vpop.permute.xlu1 %316  ;;  %v301_v50 = vpop.permute.xlu0 %300 }
  0xea   : > { %353 = vst.msk [vmem:[#allocation2 + $0x60] sm:$0xff] %vm340_vm2, %v317_v49  ;;  %345 = vst.msk [vmem:[#allocation2 + $0x20] sm:$0xff] %vm340_vm2, %v301_v50 }
  0xeb   : > { %614 = vrot.lane.b32.xlu1 %v1526_v45, %s1821_s24  ;;  %598 = vrot.lane.b32.xlu0 %v1935_v3, %s1821_s24  ;;  %v1542_v3 = vld [vmem:[%s1925_s10 + $0xc2] sm:$0xff] }
  0xed   : > { %v609_v52 = vpop.permute.xlu1 %608  ;;  %v593_v53 = vpop.permute.xlu0 %592  ;;  %v1042_v54 = vld [vmem:[#allocation2] sm:$0xff] }
  0xee   : > { %v1050_v55 = vld [vmem:[#allocation2 + $0x40] sm:$0xff]  ;;  %646 = vst.msk [vmem:[#allocation2 + $0x58] sm:$0xff] %vm634_vm5, %v609_v52  ;;  %638 = vst.msk [vmem:[#allocation2 + $0x18] sm:$0xff] %vm634_vm5, %v593_v53  ;;  %1603 = vmatprep.mubr.msk.f32.mxu0 %vm1070_vm10, %v1042_v54 }
  0xef   : > { %1615 = vmatprep.mubr.msk.f32.mxu1 %vm1070_vm10, %v1050_v55  ;;  %906 = vrot.lane.b32.xlu1 %v1527_v51, %s2505_s7 }
  0xf0   : > { %890 = vrot.lane.b32.xlu0 %v1932_v2, %s2505_s7 }
  0xf1   : > { %v704_v20 = vpop.permute.xlu1 %703  ;;  %v688_v56 = vpop.permute.xlu0 %687 }
  0xf2   : > { %742 = vst.msk [vmem:[#allocation2 + $0x50] sm:$0xff] %vm731_vm6, %v704_v20  ;;  %734 = vst.msk [vmem:[#allocation2 + $0x10] sm:$0xff] %vm731_vm6, %v688_v56 }
  0xf3   : > { %1001 = vrot.lane.b32.xlu1 %v1542_v3, %s1825_s8 }
  0xf4   : > { %985 = vrot.lane.b32.xlu0 %v1956_v8, %s1825_s8 }
  0xf5   : > { %v996_v57 = vpop.permute.xlu1 %995  ;;  %v980_v58 = vpop.permute.xlu0 %979 }
  0xf6   : > { %1035 = vst.msk [vmem:[#allocation2 + $0x48] sm:$0xff] %vm1025_vm9, %v996_v57  ;;  %1027 = vst.msk [vmem:[#allocation2 + $0x8] sm:$0xff] %vm1025_vm9, %v980_v58 }
  0xf7   : > { %616 = vrot.lane.b32.xlu1 %v1527_v51, %s1821_s24 }
  0xf8   : > { %600 = vrot.lane.b32.xlu0 %v1932_v2, %s1821_s24 }
  0xf9   : > { %v319_v59 = vpop.permute.xlu1 %318  ;;  %v303_v60 = vpop.permute.xlu0 %302 }
  0xfa   : > { %354 = vst.msk [vmem:[#allocation2 + $0x68] sm:$0xff] %vm340_vm2, %v319_v59  ;;  %346 = vst.msk [vmem:[#allocation2 + $0x28] sm:$0xff] %vm340_vm2, %v303_v60 }
  0xfb   : > { %711 = vrot.lane.b32.xlu1 %v1542_v3, %s1822_s27 }
  0xfc   : > { %695 = vrot.lane.b32.xlu0 %v1956_v8, %s1822_s27 }
  0xfd   : > { %v414_v62 = vpop.permute.xlu1 %413  ;;  %v398_v63 = vpop.permute.xlu0 %397  ;;  %v1043_v0 = vld [vmem:[#allocation2 + $0x8] sm:$0xff] }
  0xfe   : > { %v1051_v1 = vld [vmem:[#allocation2 + $0x48] sm:$0xff]  ;;  %450 = vst.msk [vmem:[#allocation2 + $0x60] sm:$0xff] %vm437_vm3, %v414_v62  ;;  %442 = vst.msk [vmem:[#allocation2 + $0x20] sm:$0xff] %vm437_vm3, %v398_v63  ;;  %1604 = vmatmul.mubr.msk.f32.vlgmr.msra.gmra.mrb[0].mxu0 %vm1070_vm10, %v1043_v0 }
  0xff   : > { %1616 = vmatmul.mubr.msk.f32.vlgmr.msra.gmra.mrb[0].mxu1 %vm1070_vm10, %v1051_v1  ;;  %1003 = vrot.lane.b32.xlu1 %v1543_v61, %s1825_s8 }
 0x100   : > { %987 = vrot.lane.b32.xlu0 %v1983_v14, %s1825_s8 }
 0x101   : > { %v706_v2 = vpop.permute.xlu1 %705  ;;  %v690_v8 = vpop.permute.xlu0 %689 }
 0x102   : > { %743 = vst.msk [vmem:[#allocation2 + $0x58] sm:$0xff] %vm731_vm6, %v706_v2  ;;  %735 = vst.msk [vmem:[#allocation2 + $0x18] sm:$0xff] %vm731_vm6, %v690_v8 }
 0x103   : > { %713 = vrot.lane.b32.xlu1 %v1543_v61, %s1822_s27 }
 0x104   : > { %697 = vrot.lane.b32.xlu0 %v1983_v14, %s1822_s27  ;;  %v1528_v14 = vld [vmem:[%s1925_s10 + $0xd9] sm:$0xff] }
 0x105   : > { %v804_v7 = vpop.permute.xlu1 %803  ;;  %v788_v9 = vpop.permute.xlu0 %787 }
 0x106   : > { %842 = vst.msk [vmem:[#allocation2 + $0x50] sm:$0xff] %vm831_vm7, %v804_v7  ;;  %834 = vst.msk [vmem:[#allocation2 + $0x10] sm:$0xff] %vm831_vm7, %v788_v9 }
 0x107   : > { %811 = vrot.lane.b32.xlu1 %v1512_v5, %s1823_s28 }
 0x108   : > { %795 = vrot.lane.b32.xlu0 %v1938_v4, %s1823_s28  ;;  %v1529_v4 = vld [vmem:[%s1925_s10 + $0xe1] sm:$0xff] }
 0x109   : > { %v416_v11 = vpop.permute.xlu1 %415  ;;  %v400_v12 = vpop.permute.xlu0 %399 }
 0x10a   : > { %451 = vst.msk [vmem:[#allocation2 + $0x68] sm:$0xff] %vm437_vm3, %v416_v11  ;;  %443 = vst.msk [vmem:[#allocation2 + $0x28] sm:$0xff] %vm437_vm3, %v400_v12 }
 0x10b   : > { %813 = vrot.lane.b32.xlu1 %v1513_v10, %s1823_s28 }
 0x10c   : > { %797 = vrot.lane.b32.xlu0 %v1942_v6, %s1823_s28  ;;  %v1544_v6 = vld [vmem:[%s1925_s10 + $0xda] sm:$0xff]  ;;  %s1571_s28 = sshll.u32 %s1800_s15, 4 }
 0x10d   : > { %v514_v13 = vpop.permute.xlu1 %513  ;;  %v498_v15 = vpop.permute.xlu0 %497 }
 0x10e   : > { %550 = vst.msk [vmem:[#allocation2 + $0x60] sm:$0xff] %vm537_vm4, %v514_v13  ;;  %542 = vst.msk [vmem:[#allocation2 + $0x20] sm:$0xff] %vm537_vm4, %v498_v15 }
 0x10f   : > { %908 = vrot.lane.b32.xlu1 %v1528_v14, %s2505_s7 }
 0x110   : > { %892 = vrot.lane.b32.xlu0 %v2030_v24, %s2505_s7  ;;  %v1545_v24 = vld [vmem:[%s1925_s10 + $0xe2] sm:$0xff]  ;;  %s208_s10 = sand.u32 1, %s1792_s13  }
 0x111   : > { %v806_v16 = vpop.permute.xlu1 %805  ;;  %v790_v17 = vpop.permute.xlu0 %789  ;;  %s1442_s24 = sshll.u32 %s208_s10, 7  ;;  %s2444_s6 = scalar_lea.sflag [#allocation4], %s208_s10 }
 0x112   : > { %843 = vst.msk [vmem:[#allocation2 + $0x58] sm:$0xff] %vm831_vm7, %v806_v16  ;;  %835 = vst.msk [vmem:[#allocation2 + $0x18] sm:$0xff] %vm831_vm7, %v790_v17  ;;  %s2402_s27 = scalar_lea.vmem [#allocation3], %s1442_s24  ;;  %s1728_s24 = scalar_lea.vmem %s1727_s21, 4096 }
 0x113   : > { %910 = vrot.lane.b32.xlu1 %v1529_v4, %s2505_s7  ;;  %s1318_s5 = sshll.u32 %s2402_s27, 4  ;;  %s2436_s5 = int_to_ptr.vmem [resolvable:$true] %s1318_s5 }
 0x114   : > { %894 = vrot.lane.b32.xlu0 %v2040_v26, %s2505_s7  ;;  %s1722_s7 = scalar_lea.vmem %s2436_s5, 2048  ;;  %p1729_p2 = scmp.lt.s32.totalorder %s2436_s5, %s1727_s21 }
 0x115   : > { %v901_v18 = vpop.permute.xlu1 %900  ;;  %v885_v19 = vpop.permute.xlu0 %884  ;;  %p1723_p13 = scmp.ne.s32.totalorder %s2436_s5, %s1722_s7  ;;  %p1730_p4 = scmp.lt.s32.totalorder %s1728_s24, %s1722_s7 }
 0x116   : > { %939 = vst.msk [vmem:[#allocation2 + $0x50] sm:$0xff] %vm928_vm8, %v901_v18  ;;  %931 = vst.msk [vmem:[#allocation2 + $0x10] sm:$0xff] %vm928_vm8, %v885_v19 }
 0x117   : > { %1005 = vrot.lane.b32.xlu1 %v1544_v6, %s1825_s8  ;;  %p1724_p0 = pnand %p1723_p13, %p1899_p3  ;;  %p1731_p5 = por %p1730_p4, %p1729_p2 }
 0x118   : > { %989 = vrot.lane.b32.xlu0 %v2047_v28, %s1825_s8 }
 0x119   : > { %v516_v22 = vpop.permute.xlu1 %515  ;;  %v500_v23 = vpop.permute.xlu0 %499  ;;  %p1725_p1 = pneg %p1724_p0 }
 0x11a   : > { %551 = vst.msk [vmem:[#allocation2 + $0x68] sm:$0xff] %vm537_vm4, %v516_v22  ;;  %543 = vst.msk [vmem:[#allocation2 + $0x28] sm:$0xff] %vm537_vm4, %v500_v23 }
 0x11b   : > { %1007 = vrot.lane.b32.xlu1 %v1545_v24, %s1825_s8  ;;  %p1732_p6 = pnand %p1731_p5, %p1725_p1 }
 0x11c   : > { %991 = vrot.lane.b32.xlu0 %v2060_v30, %s1825_s8  ;;  %s1567_s8 = sshll.u32 %s1804_s16, 5 }
 0x11d   : > { %v611_v26 = vpop.permute.xlu1 %610  ;;  %v595_v25 = vpop.permute.xlu0 %594  ;;  %s1315_s9 = sadd.s32 %s1571_s28, %s1567_s8 }
 0x11e   : > { %647 = vst.msk [vmem:[#allocation2 + $0x60] sm:$0xff] %vm634_vm5, %v611_v26  ;;  %639 = vst.msk [vmem:[#allocation2 + $0x20] sm:$0xff] %vm634_vm5, %v595_v25  ;;  %s1568_s4 = sshll.u32 %s1315_s9, 7 }
 0x11f   : > { %s2434_s29 = scalar_lea.hbm %s2500_s3, %s1568_s4 }
 0x121   : > { %v903_v27 = vpop.permute.xlu1 %902  ;;  %v887_v28 = vpop.permute.xlu0 %886 }
 0x122   : > { %940 = vst.msk [vmem:[#allocation2 + $0x58] sm:$0xff] %vm928_vm8, %v903_v27  ;;  %932 = vst.msk [vmem:[#allocation2 + $0x18] sm:$0xff] %vm928_vm8, %v887_v28 }
 0x125   : > { %v998_v29 = vpop.permute.xlu1 %997  ;;  %v982_v31 = vpop.permute.xlu0 %981 }
 0x126   : > { %1036 = vst.msk [vmem:[#allocation2 + $0x50] sm:$0xff] %vm1025_vm9, %v998_v29  ;;  %1028 = vst.msk [vmem:[#allocation2 + $0x10] sm:$0xff] %vm1025_vm9, %v982_v31 }
 0x129   : > { %v321_v32 = vpop.permute.xlu1 %320  ;;  %v305_v30 = vpop.permute.xlu0 %304 }
 0x12a   : > { %355 = vst.msk [vmem:[#allocation2 + $0x70] sm:$0xff] %vm340_vm2, %v321_v32  ;;  %347 = vst.msk [vmem:[#allocation2 + $0x30] sm:$0xff] %vm340_vm2, %v305_v30  ;;  %v2394_v32 = vld [vmem:[%s2499_s2] ss:$0 sm:$0xff] }
 0x12d   : > { %v613_v33 = vpop.permute.xlu1 %612  ;;  %v597_v34 = vpop.permute.xlu0 %596  ;;  %v1044_v35 = vld [vmem:[#allocation2 + $0x10] sm:$0xff] }
 0x12e   : > { %v1052_v36 = vld [vmem:[#allocation2 + $0x50] sm:$0xff]  ;;  %648 = vst.msk [vmem:[#allocation2 + $0x68] sm:$0xff] %vm634_vm5, %v613_v33  ;;  %640 = vst.msk [vmem:[#allocation2 + $0x28] sm:$0xff] %vm634_vm5, %v597_v34  ;;  %1606 = vmatprep.mubr.msk.f32.mxu0 %vm1070_vm10, %v1044_v35 }
 0x12f   : > { %1618 = vmatprep.mubr.msk.f32.mxu1 %vm1070_vm10, %v1052_v36 }
 0x131   : > { %v708_v37 = vpop.permute.xlu1 %707  ;;  %v692_v38 = vpop.permute.xlu0 %691 }
 0x132   : > { %744 = vst.msk [vmem:[#allocation2 + $0x60] sm:$0xff] %vm731_vm6, %v708_v37  ;;  %736 = vst.msk [vmem:[#allocation2 + $0x20] sm:$0xff] %vm731_vm6, %v692_v38 }
 0x135   : > { %v1000_v39 = vpop.permute.xlu1 %999  ;;  %v984_v40 = vpop.permute.xlu0 %983 }
 0x136   : > { %1037 = vst.msk [vmem:[#allocation2 + $0x58] sm:$0xff] %vm1025_vm9, %v1000_v39  ;;  %1029 = vst.msk [vmem:[#allocation2 + $0x18] sm:$0xff] %vm1025_vm9, %v984_v40 }
 0x139   : > { %v323_v41 = vpop.permute.xlu1 %322  ;;  %v307_v42 = vpop.permute.xlu0 %306 }
 0x13a   : > { %356 = vst.msk [vmem:[#allocation2 + $0x78] sm:$0xff] %vm340_vm2, %v323_v41  ;;  %348 = vst.msk [vmem:[#allocation2 + $0x38] sm:$0xff] %vm340_vm2, %v307_v42 }
 0x13d   : > { %v418_v43 = vpop.permute.xlu1 %417  ;;  %v402_v44 = vpop.permute.xlu0 %401  ;;  %v1045_v45 = vld [vmem:[#allocation2 + $0x18] sm:$0xff] }
 0x13e   : > { %v1053_v46 = vld [vmem:[#allocation2 + $0x58] sm:$0xff]  ;;  %452 = vst.msk [vmem:[#allocation2 + $0x70] sm:$0xff] %vm437_vm3, %v418_v43  ;;  %444 = vst.msk [vmem:[#allocation2 + $0x30] sm:$0xff] %vm437_vm3, %v402_v44  ;;  %1607 = vmatmul.mubr.msk.f32.gmra.mrb[2].mxu0 %vm1070_vm10, %v1045_v45 }
 0x13f   : > { %1619 = vmatmul.mubr.msk.f32.gmra.mrb[2].mxu1 %vm1070_vm10, %v1053_v46 }
 0x141   : > { %v710_v47 = vpop.permute.xlu1 %709  ;;  %v694_v21 = vpop.permute.xlu0 %693 }
 0x142   : > { %745 = vst.msk [vmem:[#allocation2 + $0x68] sm:$0xff] %vm731_vm6, %v710_v47  ;;  %737 = vst.msk [vmem:[#allocation2 + $0x28] sm:$0xff] %vm731_vm6, %v694_v21 }
 0x145   : > { %v808_v48 = vpop.permute.xlu1 %807  ;;  %v792_v49 = vpop.permute.xlu0 %791 }
 0x146   : > { %844 = vst.msk [vmem:[#allocation2 + $0x60] sm:$0xff] %vm831_vm7, %v808_v48  ;;  %836 = vst.msk [vmem:[#allocation2 + $0x20] sm:$0xff] %vm831_vm7, %v792_v49 }
 0x149   : > { %v420_v50 = vpop.permute.xlu1 %419  ;;  %v404_v51 = vpop.permute.xlu0 %403 }
 0x14a   : > { %453 = vst.msk [vmem:[#allocation2 + $0x78] sm:$0xff] %vm437_vm3, %v420_v50  ;;  %445 = vst.msk [vmem:[#allocation2 + $0x38] sm:$0xff] %vm437_vm3, %v404_v51 }
 0x14d   : > { %v518_v52 = vpop.permute.xlu1 %517  ;;  %v502_v53 = vpop.permute.xlu0 %501 }
 0x14e   : > { %552 = vst.msk [vmem:[#allocation2 + $0x70] sm:$0xff] %vm537_vm4, %v518_v52  ;;  %544 = vst.msk [vmem:[#allocation2 + $0x30] sm:$0xff] %vm537_vm4, %v502_v53 }
 0x151   : > { %v810_v54 = vpop.permute.xlu1 %809  ;;  %v794_v55 = vpop.permute.xlu0 %793 }
 0x152   : > { %845 = vst.msk [vmem:[#allocation2 + $0x68] sm:$0xff] %vm831_vm7, %v810_v54  ;;  %837 = vst.msk [vmem:[#allocation2 + $0x28] sm:$0xff] %vm831_vm7, %v794_v55 }
 0x155   : > { %v905_v3 = vpop.permute.xlu1 %904  ;;  %v889_v20 = vpop.permute.xlu0 %888 }
 0x156   : > { %941 = vst.msk [vmem:[#allocation2 + $0x60] sm:$0xff] %vm928_vm8, %v905_v3  ;;  %933 = vst.msk [vmem:[#allocation2 + $0x20] sm:$0xff] %vm928_vm8, %v889_v20 }
 0x159   : > { %v520_v56 = vpop.permute.xlu1 %519  ;;  %v504_v57 = vpop.permute.xlu0 %503 }
 0x15a   : > { %553 = vst.msk [vmem:[#allocation2 + $0x78] sm:$0xff] %vm537_vm4, %v520_v56  ;;  %545 = vst.msk [vmem:[#allocation2 + $0x38] sm:$0xff] %vm537_vm4, %v504_v57 }
 0x15d   : > { %v615_v58 = vpop.permute.xlu1 %614  ;;  %v599_v59 = vpop.permute.xlu0 %598 }
 0x15e   : > { %649 = vst.msk [vmem:[#allocation2 + $0x70] sm:$0xff] %vm634_vm5, %v615_v58  ;;  %641 = vst.msk [vmem:[#allocation2 + $0x30] sm:$0xff] %vm634_vm5, %v599_v59 }
 0x161   : > { %v907_v60 = vpop.permute.xlu1 %906 }
 0x162   : > { %v891_v61 = vpop.permute.xlu0 %890  ;;  %942 = vst.msk [vmem:[#allocation2 + $0x68] sm:$0xff] %vm928_vm8, %v907_v60 }
 0x163   : > { %934 = vst.msk [vmem:[#allocation2 + $0x28] sm:$0xff] %vm928_vm8, %v891_v61 }
 0x165   : > { %v1002_v62 = vpop.permute.xlu1 %1001 }
 0x166   : > { %v986_v63 = vpop.permute.xlu0 %985  ;;  %1038 = vst.msk [vmem:[#allocation2 + $0x60] sm:$0xff] %vm1025_vm9, %v1002_v62 }
 0x167   : > { %1030 = vst.msk [vmem:[#allocation2 + $0x20] sm:$0xff] %vm1025_vm9, %v986_v63 }
 0x169   : > { %v617_v0 = vpop.permute.xlu1 %616 }
 0x16a   : > { %v601_v1 = vpop.permute.xlu0 %600  ;;  %650 = vst.msk [vmem:[#allocation2 + $0x78] sm:$0xff] %vm634_vm5, %v617_v0 }
 0x16b   : > { %642 = vst.msk [vmem:[#allocation2 + $0x38] sm:$0xff] %vm634_vm5, %v601_v1 }
 0x16d   : > { %v712_v2 = vpop.permute.xlu1 %711  ;;  %v1054_v7 = vld [vmem:[#allocation2 + $0x60] sm:$0xff] }
 0x16e   : > { %v696_v8 = vpop.permute.xlu0 %695  ;;  %v1046_v5 = vld [vmem:[#allocation2 + $0x20] sm:$0xff]  ;;  %746 = vst.msk [vmem:[#allocation2 + $0x70] sm:$0xff] %vm731_vm6, %v712_v2  ;;  %1621 = vmatprep.mubr.msk.f32.mxu1 %vm1070_vm10, %v1054_v7 }
 0x16f   : > { %738 = vst.msk [vmem:[#allocation2 + $0x30] sm:$0xff] %vm731_vm6, %v696_v8  ;;  %1609 = vmatprep.mubr.msk.f32.mxu0 %vm1070_vm10, %v1046_v5 }
 0x171   : > { %v1004_v9 = vpop.permute.xlu1 %1003 }
 0x172   : > { %v988_v10 = vpop.permute.xlu0 %987  ;;  %1039 = vst.msk [vmem:[#allocation2 + $0x68] sm:$0xff] %vm1025_vm9, %v1004_v9 }
 0x173   : > { %1031 = vst.msk [vmem:[#allocation2 + $0x28] sm:$0xff] %vm1025_vm9, %v988_v10 }
 0x175   : > { %v714_v11 = vpop.permute.xlu1 %713 }
 0x176   : > { %v698_v12 = vpop.permute.xlu0 %697  ;;  %747 = vst.msk [vmem:[#allocation2 + $0x78] sm:$0xff] %vm731_vm6, %v714_v11 }
 0x177   : > { %739 = vst.msk [vmem:[#allocation2 + $0x38] sm:$0xff] %vm731_vm6, %v698_v12 }
 0x179   : > { %v812_v14 = vpop.permute.xlu1 %811  ;;  %v1055_v4 = vld [vmem:[#allocation2 + $0x68] sm:$0xff] }
 0x17a   : > { %v796_v13 = vpop.permute.xlu0 %795  ;;  %v1047_v15 = vld [vmem:[#allocation2 + $0x28] sm:$0xff]  ;;  %846 = vst.msk [vmem:[#allocation2 + $0x70] sm:$0xff] %vm831_vm7, %v812_v14  ;;  %1622 = vmatmul.mubr.msk.f32.gmra.mrb[4].mxu1 %vm1070_vm10, %v1055_v4 }
 0x17b   : > { %838 = vst.msk [vmem:[#allocation2 + $0x30] sm:$0xff] %vm831_vm7, %v796_v13  ;;  %1610 = vmatmul.mubr.msk.f32.gmra.mrb[4].mxu0 %vm1070_vm10, %v1047_v15 }
 0x17d   : > { %v814_v16 = vpop.permute.xlu1 %813 }
 0x17e   : > { %v798_v17 = vpop.permute.xlu0 %797  ;;  %847 = vst.msk [vmem:[#allocation2 + $0x78] sm:$0xff] %vm831_vm7, %v814_v16 }
 0x17f   : > { %839 = vst.msk [vmem:[#allocation2 + $0x38] sm:$0xff] %vm831_vm7, %v798_v17 }
 0x181   : > { %v909_v6 = vpop.permute.xlu1 %908 }
 0x182   : > { %v893_v18 = vpop.permute.xlu0 %892  ;;  %943 = vst.msk [vmem:[#allocation2 + $0x70] sm:$0xff] %vm928_vm8, %v909_v6 }
 0x183   : > { %935 = vst.msk [vmem:[#allocation2 + $0x30] sm:$0xff] %vm928_vm8, %v893_v18 }
 0x185   : > { %v911_v19 = vpop.permute.xlu1 %910 }
 0x186   : > { %v895_v24 = vpop.permute.xlu0 %894  ;;  %944 = vst.msk [vmem:[#allocation2 + $0x78] sm:$0xff] %vm928_vm8, %v911_v19 }
 0x187   : > { %936 = vst.msk [vmem:[#allocation2 + $0x38] sm:$0xff] %vm928_vm8, %v895_v24 }
 0x189   : > { %v1006_v22 = vpop.permute.xlu1 %1005 }
 0x18a   : > { %v990_v23 = vpop.permute.xlu0 %989  ;;  %1040 = vst.msk [vmem:[#allocation2 + $0x70] sm:$0xff] %vm1025_vm9, %v1006_v22 }
 0x18b   : > { %1032 = vst.msk [vmem:[#allocation2 + $0x30] sm:$0xff] %vm1025_vm9, %v990_v23 }
 0x18d   : > { %v1008_v26 = vpop.permute.xlu1 %1007 }
 0x18e   : > { %v992_v25 = vpop.permute.xlu0 %991  ;;  %1041 = vst.msk [vmem:[#allocation2 + $0x78] sm:$0xff] %vm1025_vm9, %v1008_v26 }
 0x18f   : > { %1033 = vst.msk [vmem:[#allocation2 + $0x38] sm:$0xff] %vm1025_vm9, %v992_v25 }
 0x191   : > { %v1056_v28 = vld [vmem:[#allocation2 + $0x70] sm:$0xff] }
 0x192   : > { %v1048_v27 = vld [vmem:[#allocation2 + $0x30] sm:$0xff]  ;;  %1624 = vmatprep.mubr.msk.f32.mxu1 %vm1070_vm10, %v1056_v28 }
 0x193   : > { %1612 = vmatprep.mubr.msk.f32.mxu0 %vm1070_vm10, %v1048_v27 }
 0x195   : > { %v1057_v31 = vld [vmem:[#allocation2 + $0x78] sm:$0xff] }
 0x196   : > { %v1049_v29 = vld [vmem:[#allocation2 + $0x38] sm:$0xff]  ;;  %1625 = vmatmul.mubr.msk.f32.gmra.mrb[6].mxu1 %vm1070_vm10, %v1057_v31 }
 0x197   : > { %1613 = vmatmul.mubr.msk.f32.gmra.mrb[6].mxu0 %vm1070_vm10, %v1049_v29 }
 0x1d1   : > { %v1605_v30 = vpop.f32.mrb[0].mxu0 }
 0x1d2   : > { %v1617_v33 = vpop.f32.mrb[0].mxu1  ;;  %v1195_v34 = vadd.f32 %v1605_v30, %v2394_v32  ;;  %v1189_v36 = vpop.f32.mrb[1].mxu0 }
 0x1d3   : > { %v1235_v35 = vadd.f32 %v1617_v33, %v2394_v32  ;;  %v1229_v37 = vpop.f32.mrb[1].mxu1  ;;  %v1190_v38 = vadd.f32 %v2394_v32, %v1189_v36 }
 0x1d4   : > { %v1230_v39 = vadd.f32 %v2394_v32, %v1229_v37  ;;  %v1269_v40 = vmax.f32 %v1195_v34, 0.0 }
 0x1d5   : > { %v1277_v41 = vmax.f32 %v1235_v35, 0.0  ;;  %v1268_v42 = vmax.f32 %v1190_v38, 0.0 }
 0x1d6   : > { %v1276_v43 = vmax.f32 %v1230_v39, 0.0  ;;  %1285 = vst [vmem:[%s2402_s27 + $0x8] sm:$0xff] %v1269_v40 }
 0x1d7   : > { %1293 = vst [vmem:[%s2402_s27 + $0x48] sm:$0xff] %v1277_v41  ;;  %1284 = vst [vmem:[%s2402_s27] sm:$0xff] %v1268_v42 }
 0x1d8   : > { %1292 = vst [vmem:[%s2402_s27 + $0x40] sm:$0xff] %v1276_v43 }
 0x211   : > { %v1608_v44 = vpop.f32.mrb[2].mxu0 }
 0x212   : > { %v1620_v45 = vpop.f32.mrb[2].mxu1  ;;  %v1205_v46 = vadd.f32 %v1608_v44, %v2394_v32  ;;  %v1199_v21 = vpop.f32.mrb[3].mxu0 }
 0x213   : > { %v1245_v47 = vadd.f32 %v1620_v45, %v2394_v32  ;;  %v1239_v48 = vpop.f32.mrb[3].mxu1  ;;  %v1200_v49 = vadd.f32 %v2394_v32, %v1199_v21 }
 0x214   : > { %v1240_v50 = vadd.f32 %v2394_v32, %v1239_v48  ;;  %v1271_v51 = vmax.f32 %v1205_v46, 0.0 }
 0x215   : > { %v1279_v52 = vmax.f32 %v1245_v47, 0.0  ;;  %v1270_v53 = vmax.f32 %v1200_v49, 0.0 }
 0x216   : > { %v1278_v54 = vmax.f32 %v1240_v50, 0.0  ;;  %1287 = vst [vmem:[%s2402_s27 + $0x18] sm:$0xff] %v1271_v51 }
 0x217   : > { %1295 = vst [vmem:[%s2402_s27 + $0x58] sm:$0xff] %v1279_v52  ;;  %1286 = vst [vmem:[%s2402_s27 + $0x10] sm:$0xff] %v1270_v53 }
 0x218   : > { %1294 = vst [vmem:[%s2402_s27 + $0x50] sm:$0xff] %v1278_v54 }
 0x24d   : > { %v1623_v3 = vpop.f32.mrb[4].mxu1 }
 0x24e   : > { %v1611_v55 = vpop.f32.mrb[4].mxu0  ;;  %v1255_v56 = vadd.f32 %v1623_v3, %v2394_v32  ;;  %v1249_v58 = vpop.f32.mrb[5].mxu1 }
 0x24f   : > { %v1215_v20 = vadd.f32 %v1611_v55, %v2394_v32  ;;  %v1209_v57 = vpop.f32.mrb[5].mxu0  ;;  %v1250_v60 = vadd.f32 %v2394_v32, %v1249_v58 }
 0x250   : > { %v1210_v59 = vadd.f32 %v2394_v32, %v1209_v57  ;;  %v1281_v62 = vmax.f32 %v1255_v56, 0.0 }
 0x251   : > { %v1273_v61 = vmax.f32 %v1215_v20, 0.0  ;;  %v1280_v0 = vmax.f32 %v1250_v60, 0.0 }
 0x252   : > { %v1272_v63 = vmax.f32 %v1210_v59, 0.0  ;;  %1297 = vst [vmem:[%s2402_s27 + $0x68] sm:$0xff] %v1281_v62 }
 0x253   : > { %1289 = vst [vmem:[%s2402_s27 + $0x28] sm:$0xff] %v1273_v61  ;;  %1296 = vst [vmem:[%s2402_s27 + $0x60] sm:$0xff] %v1280_v0 }
 0x254   : > { %1288 = vst [vmem:[%s2402_s27 + $0x20] sm:$0xff] %v1272_v63 }
 0x269   : > { %v1626_v2 = vpop.f32.mrb[6].mxu1 }
 0x26a   : > { %v1614_v1 = vpop.f32.mrb[6].mxu0  ;;  %v1265_v5 = vadd.f32 %v1626_v2, %v2394_v32  ;;  %v1259_v9 = vpop.f32.mrb[7].mxu1 }
 0x26b   : > { %v1225_v8 = vadd.f32 %v1614_v1, %v2394_v32  ;;  %v1219_v7 = vpop.f32.mrb[7].mxu0  ;;  %v1260_v11 = vadd.f32 %v2394_v32, %v1259_v9 }
 0x26c   : > { %v1220_v10 = vadd.f32 %v2394_v32, %v1219_v7  ;;  %v1283_v14 = vmax.f32 %v1265_v5, 0.0 }
 0x26d   : > { %v1275_v12 = vmax.f32 %v1225_v8, 0.0  ;;  %v1282_v15 = vmax.f32 %v1260_v11, 0.0 }
 0x26e   : > { %v1274_v13 = vmax.f32 %v1220_v10, 0.0  ;;  %1299 = vst [vmem:[%s2402_s27 + $0x78] sm:$0xff] %v1283_v14 }
 0x26f   : > { %1291 = vst [vmem:[%s2402_s27 + $0x38] sm:$0xff] %v1275_v12  ;;  %1298 = vst [vmem:[%s2402_s27 + $0x70] sm:$0xff] %v1282_v15 }
 0x270   : > { %1290 = vst [vmem:[%s2402_s27 + $0x30] sm:$0xff] %v1274_v13 }
 0x271   : > { %1735 = shalt.err (!%p1732_p6)
}
 0x272   : > { %s1736_s10 = scalar_lea.hbm %s2434_s29, 2048  ;;  %s1740_s8 = scalar_lea.hbm %s2500_s3, 8192 }
 0x273   : > { %p1737_p7 = scmp.ne.s32.totalorder %s2434_s29, %s1736_s10  ;;  %p1741_p11 = scmp.lt.u32.totalorder %s2434_s29, %s2500_s3 }
 0x274   : > { %p1742_p12 = scmp.lt.u32.totalorder %s1740_s8, %s1736_s10  ;;  %p1744_p0 = scmp.lt.u32.totalorder %s1736_s10, %s2434_s29 }
 0x275   : > { %p1738_p9 = pnand %p1737_p7, %p1899_p3 }
 0x276   : > { %p1743_p13 = por %p1742_p12, %p1741_p11 }
 0x277   : > { %p1739_p10 = pneg %p1738_p9 }
 0x278   : > { %p1745_p1 = por %p1744_p0, %p1743_p13 }
 0x27a   : > { %p1746_p2 = pnand %p1745_p1, %p1739_p10 }
 0x27c   : > { %1749 = shalt.err (!%p1746_p2)
}
 0x27d   : > { %s1827_s15 = smov 128  }
 0x27e   : > { %1642 = dma.vmem_to_hbm [thread:$0]  (%p1899_p3), %s2436_s5, 2048, %s2434_s29, %s2444_s6, %s1827_s15, %s1827_s15, %s1819_s20  }
 0x27f PF: > { %p1648_p4 = scmp.ge.s32.totalorder %s1816_s19, 2  ;;  %s1333_s16 = sand.u32 1, %s1788_s12  }
 0x280   : > { %s1334_s7 = scalar_lea.sflag [#allocation4], %s1333_s16 }
 0x281   : > { %p1645_p5 = pnand %p1648_p4, %p1908_p8 }
 0x283   : > { %1783 = dma.done.wait (!%p1645_p5), %s1334_s7, 2048  }
 0x284   : > { %1785 = vsyncadd (!%p1645_p5), %s1334_s7, 4294965248  ;;  %s16_s19 = sadd.s32 1, %s1816_s19   ;;  %s2506_s12 = smov %s1792_s13 }
 0x285   : > { %p13_p6 = scmp.ge.s32.totalorder %s16_s19, 6   ;;  %s2507_s13 = smov %s1796_s14 }
 0x286   : > { %s2508_s14 = smov %s1917_s30  ;;  %s2509_s15 = smov %s1808_s17 }
 0x287   : > { %s2510_s16 = smov %s1812_s18  ;;  %s2511_s17 = smov %s2514_s22 }
 0x288   : > { %s2512_s18 = smov %s2518_s23  ;;  %15 = sbr.rel (!%p13_p6) target bundleno = 5 (0x5), region = 76 }
 0x28f   :  { %1339 = vsyncpa [#allocation4], 1 }
 0x290   :  { %1341 = vsyncpa [#allocation4 + $0x1], 1 }

</bundles_post_ra>
